<compile_context>
chip_gen: v6e
topology: v6e:2x2x1
jax: 0.10.0
libtpu: 0.0.40
codegen_flags: <defaults>
</compile_context>

<pallas_src>
import functools

import jax
import jax.numpy as jnp
from jax.experimental import pallas as pl
from jax.experimental.pallas import tpu as pltpu


def qnetwork_kernel(x_ref,
                    w1_ref, b1_ref,
                    w2_ref, b2_ref,
                    w3_ref, b3_ref,
                    w4_ref, b4_ref,
                    out_ref):
    """Fused 4-layer MLP: bf16 MXU matmuls, f32 accumulate / bias / ReLU."""
    cdt = w1_ref.dtype  # matmul input dtype (bf16)

    h = jnp.dot(x_ref[...].astype(cdt), w1_ref[...],
                preferred_element_type=jnp.float32) + b1_ref[...]
    h = jnp.maximum(h, 0.0)

    h = jnp.dot(h.astype(cdt), w2_ref[...],
                preferred_element_type=jnp.float32) + b2_ref[...]
    h = jnp.maximum(h, 0.0)

    h = jnp.dot(h.astype(cdt), w3_ref[...],
                preferred_element_type=jnp.float32) + b3_ref[...]
    h = jnp.maximum(h, 0.0)

    out = jnp.dot(h.astype(cdt), w4_ref[...],
                  preferred_element_type=jnp.float32) + b4_ref[...]
    out_ref[...] = out.astype(out_ref.dtype)


def _round_up(v, m):
    return (v + m - 1) // m * m


def prepare_params(params, compute_dtype=jnp.bfloat16):
    """One-time preprocessing (hoisted out of the jitted forward):
    weights -> compute_dtype (MXU-native), biases -> f32 row vectors (1, N)."""
    prepped = []
    for w, b in params:
        prepped.append((jnp.asarray(w, compute_dtype),
                        jnp.asarray(b, jnp.float32).reshape(1, -1)))
    return tuple(prepped)


@functools.partial(jax.jit, static_argnames=("tile_b",))
def qnetwork_forward(x, prepared_params, *, tile_b=4096):
    """x: (B, state_size) float32 -> (B, action_size) float32."""
    (w1, b1), (w2, b2), (w3, b3), (w4, b4) = prepared_params
    B, state_size = x.shape
    action_size = w4.shape[1]

    # Sublane alignment only: pad the batch to a multiple of 8 iff needed
    # (no extra HBM pass when B is already 8-aligned).
    B_pad = _round_up(max(B, 8), 8)
    if B_pad != B:
        x = jnp.pad(x, ((0, B_pad - B), (0, 0)))

    # Batch tile: large enough to amortize per-step pipeline overhead, small
    # enough that the "parallel" batch axis yields >= 2 steps for v7x megacore
    # when the batch is big enough to split.
    tb = min(tile_b, max(8, _round_up(pl.cdiv(B_pad, 2), 8)))
    num_tiles = pl.cdiv(B_pad, tb)  # ragged last block is masked by Pallas

    x_spec = pl.BlockSpec((tb, state_size), lambda i: (i, 0))
    o_spec = pl.BlockSpec((tb, action_size), lambda i: (i, 0))

    def resident(arr):  # weights/biases: constant index_map -> VMEM-resident
        return pl.BlockSpec(arr.shape, lambda i: (0, 0))

    flops = 2 * B_pad * (state_size * 32 + 32 * 64 + 64 * 64 + 64 * action_size)
    param_bytes = sum(int(w.size) * w.dtype.itemsize + int(b.size) * b.dtype.itemsize
                      for (w, b) in prepared_params)
    bytes_accessed = 4 * B_pad * (state_size + action_size) + param_bytes

    out = pl.pallas_call(
        qnetwork_kernel,
        out_shape=jax.ShapeDtypeStruct((B_pad, action_size), jnp.float32),
        grid_spec=pl.GridSpec(
            grid=(num_tiles,),
            in_specs=[
                x_spec,
                resident(w1), resident(b1),
                resident(w2), resident(b2),
                resident(w3), resident(b3),
                resident(w4), resident(b4),
            ],
            out_specs=o_spec,
        ),
        compiler_params=pltpu.CompilerParams(
            dimension_semantics=("parallel",),
            vmem_limit_bytes=32 << 20,
        ),
        cost_estimate=pl.CostEstimate(
            flops=flops, transcendentals=0, bytes_accessed=bytes_accessed),
    )(x, w1, b1, w2, b2, w3, b3, w4, b4)

    return out if B_pad == B else out[:B]


# ----------------------------- reference & init ------------------------------

def xavier_uniform(key, fan_in, fan_out):
    # Matches torch.nn.init.xavier_uniform_ semantics (gain=1).
    limit = jnp.sqrt(6.0 / (fan_in + fan_out))
    return jax.random.uniform(key, (fan_in, fan_out), jnp.float32, -limit, limit)


def init_qnetwork_params(key, state_size, action_size):
    dims = [(state_size, 32), (32, 64), (64, 64), (64, action_size)]
    keys = jax.random.split(key, len(dims))
    params = []
    for k, (fi, fo) in zip(keys, dims):
        w = xavier_uniform(k, fi, fo)
        b = jnp.full((fo,), 0.01, jnp.float32)  # bias filled with 0.01 (init_weights)
        params.append((w, b))
    return params


def qnetwork_reference(x, params):
    h = x
    for i, (w, b) in enumerate(params):
        h = h @ w + b.reshape(1, -1)
        if i < len(params) - 1:
            h = jnp.maximum(h, 0.0)
    return h


if __name__ == "__main__":
    key = jax.random.PRNGKey(0)
    kx, kx2, kp = jax.random.split(key, 3)

    state_size, action_size = 8, 4
    params = init_qnetwork_params(kp, state_size, action_size)
    prepped = prepare_params(params)

    # Small batch (pads 2 -> 8 rows, single grid step).
    x_small = jax.random.normal(kx, (2, state_size), jnp.float32)
    out_small = jax.block_until_ready(qnetwork_forward(x_small, prepped))
    ref_small = qnetwork_reference(x_small, params)
    assert out_small.shape == (2, action_size)
    assert jnp.allclose(out_small, ref_small, atol=2e-2, rtol=2e-2), (out_small, ref_small)

    # 8-aligned batch that exercises the multi-tile (2-step) pipelined path.
    x_big = jax.random.normal(kx2, (32, state_size), jnp.float32)
    out_big = jax.block_until_ready(qnetwork_forward(x_big, prepped))
    ref_big = qnetwork_reference(x_big, params)
    assert out_big.shape == (32, action_size)
    assert jnp.allclose(out_big, ref_big, atol=2e-2, rtol=2e-2), (out_big, ref_big)

    print("KERNEL_OK")
</pallas_src>

<mosaic_0001>
module attributes {stable_mosaic.version = 11 : i64} {
  func.func @qnetwork_kernel(%arg0: i32, %arg1: memref<8x8xf32, #tpu.memory_space<vmem>>, %arg2: memref<8x32xbf16, #tpu.memory_space<vmem>>, %arg3: memref<1x32xf32, #tpu.memory_space<vmem>>, %arg4: memref<32x64xbf16, #tpu.memory_space<vmem>>, %arg5: memref<1x64xf32, #tpu.memory_space<vmem>>, %arg6: memref<64x64xbf16, #tpu.memory_space<vmem>>, %arg7: memref<1x64xf32, #tpu.memory_space<vmem>>, %arg8: memref<64x4xbf16, #tpu.memory_space<vmem>>, %arg9: memref<1x4xf32, #tpu.memory_space<vmem>>, %arg10: memref<8x4xf32, #tpu.memory_space<vmem>>) attributes {dimension_semantics = [#tpu.dimension_semantics<parallel>], iteration_bounds = array<i64: 1>, scalar_prefetch = 0 : i64, scratch_operands = 0 : i64, tpu.core_type = #tpu.core_type<tc>, window_params = [{transform_indices = @transform_0, window_bounds = array<i64: 8, 8>}, {pipeline_mode = #tpu.pipeline_mode<synchronous>, transform_indices = @transform_1, window_bounds = array<i64: 8, 32>}, {pipeline_mode = #tpu.pipeline_mode<synchronous>, transform_indices = @transform_2, window_bounds = array<i64: 1, 32>}, {pipeline_mode = #tpu.pipeline_mode<synchronous>, transform_indices = @transform_3, window_bounds = array<i64: 32, 64>}, {pipeline_mode = #tpu.pipeline_mode<synchronous>, transform_indices = @transform_4, window_bounds = array<i64: 1, 64>}, {pipeline_mode = #tpu.pipeline_mode<synchronous>, transform_indices = @transform_5, window_bounds = array<i64: 64, 64>}, {pipeline_mode = #tpu.pipeline_mode<synchronous>, transform_indices = @transform_6, window_bounds = array<i64: 1, 64>}, {pipeline_mode = #tpu.pipeline_mode<synchronous>, transform_indices = @transform_7, window_bounds = array<i64: 64, 4>}, {pipeline_mode = #tpu.pipeline_mode<synchronous>, transform_indices = @transform_8, window_bounds = array<i64: 1, 4>}, {transform_indices = @transform_9, window_bounds = array<i64: 8, 4>}]} {
    %c0 = arith.constant 0 : index
    %c0_0 = arith.constant 0 : index
    %0 = vector.load %arg1[%c0, %c0_0] : memref<8x8xf32, #tpu.memory_space<vmem>>, vector<8x8xf32>
    %1 = arith.truncf %0 : vector<8x8xf32> to vector<8x8xbf16>
    %c0_1 = arith.constant 0 : index
    %c0_2 = arith.constant 0 : index
    %2 = vector.load %arg2[%c0_1, %c0_2] : memref<8x32xbf16, #tpu.memory_space<vmem>>, vector<8x32xbf16>
    %cst = arith.constant dense<0.000000e+00> : vector<8x32xf32>
    %3 = tpu.matmul %1, %2, %cst {dimension_numbers = #tpu.dot_dimension_numbers<[1], [0], [0], [1], [0, 0, 1, 1], [], []>} : vector<8x8xbf16>, vector<8x32xbf16>, vector<8x32xf32> -> vector<8x32xf32>
    %c0_3 = arith.constant 0 : index
    %c0_4 = arith.constant 0 : index
    %4 = vector.load %arg3[%c0_3, %c0_4] : memref<1x32xf32, #tpu.memory_space<vmem>>, vector<1x32xf32>
    %5 = vector.broadcast %4 : vector<1x32xf32> to vector<8x32xf32>
    %6 = arith.addf %3, %5 : vector<8x32xf32>
    %cst_5 = arith.constant 0.000000e+00 : f32
    %7 = vector.broadcast %cst_5 : f32 to vector<8x32xf32>
    %8 = arith.maximumf %6, %7 : vector<8x32xf32>
    %9 = arith.truncf %8 : vector<8x32xf32> to vector<8x32xbf16>
    %c0_6 = arith.constant 0 : index
    %c0_7 = arith.constant 0 : index
    %10 = vector.load %arg4[%c0_6, %c0_7] : memref<32x64xbf16, #tpu.memory_space<vmem>>, vector<32x64xbf16>
    %cst_8 = arith.constant dense<0.000000e+00> : vector<8x64xf32>
    %11 = tpu.matmul %9, %10, %cst_8 {dimension_numbers = #tpu.dot_dimension_numbers<[1], [0], [0], [1], [0, 0, 1, 1], [], []>} : vector<8x32xbf16>, vector<32x64xbf16>, vector<8x64xf32> -> vector<8x64xf32>
    %c0_9 = arith.constant 0 : index
    %c0_10 = arith.constant 0 : index
    %12 = vector.load %arg5[%c0_9, %c0_10] : memref<1x64xf32, #tpu.memory_space<vmem>>, vector<1x64xf32>
    %13 = vector.broadcast %12 : vector<1x64xf32> to vector<8x64xf32>
    %14 = arith.addf %11, %13 : vector<8x64xf32>
    %cst_11 = arith.constant 0.000000e+00 : f32
    %15 = vector.broadcast %cst_11 : f32 to vector<8x64xf32>
    %16 = arith.maximumf %14, %15 : vector<8x64xf32>
    %17 = arith.truncf %16 : vector<8x64xf32> to vector<8x64xbf16>
    %c0_12 = arith.constant 0 : index
    %c0_13 = arith.constant 0 : index
    %18 = vector.load %arg6[%c0_12, %c0_13] : memref<64x64xbf16, #tpu.memory_space<vmem>>, vector<64x64xbf16>
    %cst_14 = arith.constant dense<0.000000e+00> : vector<8x64xf32>
    %19 = tpu.matmul %17, %18, %cst_14 {dimension_numbers = #tpu.dot_dimension_numbers<[1], [0], [0], [1], [0, 0, 1, 1], [], []>} : vector<8x64xbf16>, vector<64x64xbf16>, vector<8x64xf32> -> vector<8x64xf32>
    %c0_15 = arith.constant 0 : index
    %c0_16 = arith.constant 0 : index
    %20 = vector.load %arg7[%c0_15, %c0_16] : memref<1x64xf32, #tpu.memory_space<vmem>>, vector<1x64xf32>
    %21 = vector.broadcast %20 : vector<1x64xf32> to vector<8x64xf32>
    %22 = arith.addf %19, %21 : vector<8x64xf32>
    %cst_17 = arith.constant 0.000000e+00 : f32
    %23 = vector.broadcast %cst_17 : f32 to vector<8x64xf32>
    %24 = arith.maximumf %22, %23 : vector<8x64xf32>
    %25 = arith.truncf %24 : vector<8x64xf32> to vector<8x64xbf16>
    %c0_18 = arith.constant 0 : index
    %c0_19 = arith.constant 0 : index
    %26 = vector.load %arg8[%c0_18, %c0_19] : memref<64x4xbf16, #tpu.memory_space<vmem>>, vector<64x4xbf16>
    %cst_20 = arith.constant dense<0.000000e+00> : vector<8x4xf32>
    %27 = tpu.matmul %25, %26, %cst_20 {dimension_numbers = #tpu.dot_dimension_numbers<[1], [0], [0], [1], [0, 0, 1, 1], [], []>} : vector<8x64xbf16>, vector<64x4xbf16>, vector<8x4xf32> -> vector<8x4xf32>
    %c0_21 = arith.constant 0 : index
    %c0_22 = arith.constant 0 : index
    %28 = vector.load %arg9[%c0_21, %c0_22] : memref<1x4xf32, #tpu.memory_space<vmem>>, vector<1x4xf32>
    %29 = vector.broadcast %28 : vector<1x4xf32> to vector<8x4xf32>
    %30 = arith.addf %27, %29 : vector<8x4xf32>
    %c0_23 = arith.constant 0 : index
    %c0_24 = arith.constant 0 : index
    %31 = vector.load %arg10[%c0_23, %c0_24] : memref<8x4xf32, #tpu.memory_space<vmem>>, vector<8x4xf32>
    tpu.vector_store %arg10[%c0_23, %c0_24], %30 {strides = array<i32>} : memref<8x4xf32, #tpu.memory_space<vmem>>, vector<8x4xf32>,
    return
  }
  func.func @transform_0(%arg0: i32) -> (i32, i32) {
    %c0_i32 = arith.constant 0 : i32
    %c0_i32_0 = arith.constant 0 : i32
    return %arg0, %c0_i32 : i32, i32
  }
  func.func @transform_1(%arg0: i32) -> (i32, i32) {
    %c0_i32 = arith.constant 0 : i32
    %c0_i32_0 = arith.constant 0 : i32
    %c0_i32_1 = arith.constant 0 : i32
    return %c0_i32, %c0_i32_0 : i32, i32
  }
  func.func @transform_2(%arg0: i32) -> (i32, i32) {
    %c0_i32 = arith.constant 0 : i32
    %c0_i32_0 = arith.constant 0 : i32
    %c0_i32_1 = arith.constant 0 : i32
    return %c0_i32, %c0_i32_0 : i32, i32
  }
  func.func @transform_3(%arg0: i32) -> (i32, i32) {
    %c0_i32 = arith.constant 0 : i32
    %c0_i32_0 = arith.constant 0 : i32
    %c0_i32_1 = arith.constant 0 : i32
    return %c0_i32, %c0_i32_0 : i32, i32
  }
  func.func @transform_4(%arg0: i32) -> (i32, i32) {
    %c0_i32 = arith.constant 0 : i32
    %c0_i32_0 = arith.constant 0 : i32
    %c0_i32_1 = arith.constant 0 : i32
    return %c0_i32, %c0_i32_0 : i32, i32
  }
  func.func @transform_5(%arg0: i32) -> (i32, i32) {
    %c0_i32 = arith.constant 0 : i32
    %c0_i32_0 = arith.constant 0 : i32
    %c0_i32_1 = arith.constant 0 : i32
    return %c0_i32, %c0_i32_0 : i32, i32
  }
  func.func @transform_6(%arg0: i32) -> (i32, i32) {
    %c0_i32 = arith.constant 0 : i32
    %c0_i32_0 = arith.constant 0 : i32
    %c0_i32_1 = arith.constant 0 : i32
    return %c0_i32, %c0_i32_0 : i32, i32
  }
  func.func @transform_7(%arg0: i32) -> (i32, i32) {
    %c0_i32 = arith.constant 0 : i32
    %c0_i32_0 = arith.constant 0 : i32
    %c0_i32_1 = arith.constant 0 : i32
    return %c0_i32, %c0_i32_0 : i32, i32
  }
  func.func @transform_8(%arg0: i32) -> (i32, i32) {
    %c0_i32 = arith.constant 0 : i32
    %c0_i32_0 = arith.constant 0 : i32
    %c0_i32_1 = arith.constant 0 : i32
    return %c0_i32, %c0_i32_0 : i32, i32
  }
  func.func @transform_9(%arg0: i32) -> (i32, i32) {
    %c0_i32 = arith.constant 0 : i32
    %c0_i32_0 = arith.constant 0 : i32
    return %arg0, %c0_i32 : i32, i32
  }
}

</mosaic_0001>

<bundles_post_ra>
// kernel: qnetwork_forward.1
= control target key start
LH: loop header
LB: loop body
LE: loop exit
PB: predicated region body
PF: predicated region fallthrough
CT: control target
= control target key end

     0   :  { %14 = vsyncpa [#allocation3], 0  ;;  %s601_s0 = inlined_call_operand.vmem [shape: f32[8,8], index: 0, kind: input, shape index: {}]   ;;  %s602_s1 = inlined_call_operand.vmem [shape: bf16[8,32], index: 1, kind: input, shape index: {}]   ;;  %s603_s2 = inlined_call_operand.vmem [shape: f32[1,32], index: 2, kind: input, shape index: {}]   ;;  %s604_s3 = inlined_call_operand.vmem [shape: bf16[32,64], index: 3, kind: input, shape index: {}]   ;;  %s605_s4 = inlined_call_operand.hbm [shape: f32[1,64], index: 4, kind: input, shape index: {}]   ;;  %s606_s5 = inlined_call_operand.vmem [shape: bf16[64,64], index: 5, kind: input, shape index: {}]   ;;  %s607_s6 = inlined_call_operand.hbm [shape: f32[1,64], index: 6, kind: input, shape index: {}]   ;;  %s608_s7 = inlined_call_operand.vmem [shape: bf16[64,4], index: 7, kind: input, shape index: {}]   ;;  %s609_s8 = inlined_call_operand.vmem [shape: f32[1,4], index: 8, kind: input, shape index: {}]   ;;  %s610_s9 = inlined_call_operand.vmem [shape: f32[8,4], index: 9, kind: output, shape index: {}]  }
   0x1   :  { %15 = vsyncpa [#allocation5], 0  ;;  %s490_s30 = smov [#allocation2]   ;;  %s491_s11 = smov [#allocation4]  }
   0x2   :  { %s30_s10 = sshll.u32 %s490_s30, 4  ;;  %s42_s12 = sshll.u32 %s491_s11, 4  ;;  %s31_s10 = int_to_ptr.vmem [resolvable:$true] %s30_s10  ;;  %s43_s12 = int_to_ptr.vmem [resolvable:$true] %s42_s12 }
   0x3   :  { %s454_s13 = scalar_lea.vmem %s31_s10, 16  ;;  %s458_s14 = scalar_lea.vmem %s31_s10, 32 }
   0x4   :  { %p455_p0 = scmp.ne.s32.totalorder %s31_s10, %s454_s13  ;;  %p459_p1 = scmp.lt.s32.totalorder %s31_s10, %s31_s10 }
   0x5   :  { %p460_p2 = scmp.lt.s32.totalorder %s458_s14, %s454_s13 }
   0x7   :  { %p461_p3 = por %p460_p2, %p459_p1 }
   0x9   :  { %p462_p4 = pnand %p461_p3, %p455_p0 }
   0xb   :  { %465 = shalt.err (!%p462_p4)
}
   0xc   :  { %33 = dma.hbm_to_vmem [thread:$0]  %s605_s4, 16, %s31_s10, [#allocation3]  }
   0xd   :  { %s474_s17 = scalar_lea.vmem %s43_s12, 16  ;;  %s478_s18 = scalar_lea.vmem %s43_s12, 32 }
   0xe   :  { %p475_p5 = scmp.ne.s32.totalorder %s43_s12, %s474_s17  ;;  %p479_p6 = scmp.lt.s32.totalorder %s43_s12, %s43_s12 }
   0xf   :  { %p480_p7 = scmp.lt.s32.totalorder %s478_s18, %s474_s17 }
  0x11   :  { %p481_p8 = por %p480_p7, %p479_p6 }
  0x13   :  { %p482_p9 = pnand %p481_p8, %p475_p5 }
  0x15   :  { %485 = shalt.err (!%p482_p9)
}
  0x16   :  { %45 = dma.hbm_to_vmem [thread:$0]  %s607_s6, 16, %s43_s12, [#allocation5]  }
  0x17   :  { %486 = dma.done.wait [#allocation3], 16  }
  0x18   :  { %487 = vsyncadd [#allocation3], 4294967280 }
  0x19   :  { %488 = dma.done.wait [#allocation5], 16  }
  0x1a   :  { %489 = vsyncadd [#allocation5], 4294967280  ;;  %v492_v0 = vmov 0.0   ;;  %vm493_vm0 = vmmov 0   ;;  %vm71_vm1 = vcmask 1043456   ;;  %v57_v2 = vld [vmem:[%s601_s0] sm:$0xff] }
  0x1b   :  { %394 = vmatprep.subr.bf16.mxu0 %v492_v0  ;;  %396 = vmatprep.mubr.msk.bf16.mxu0 %vm493_vm0, %v492_v0  ;;  %v59_v1 = vld [vmem:[%s602_s1] sm:$0xf]  ;;  %v58_v4 = vpack.c.bf16 %v57_v2, %v57_v2  ;;  %vm67_vm2 = vcmask 64512   ;;  %v436_v5 = vld [vmem:[%s604_s3 + $0x8] sm:$0xff]   ;;  %v438_v7 = vld [vmem:[%s606_s5 + $0x18] sm:$0xff]   ;;  %vm140_vm3 = vcmask 261120  }
  0x1c   :  { %400 = vmatprep.subr.bf16.mxu1 %v492_v0  ;;  %404 = vmatprep.mubr.msk.bf16.mxu1 %vm493_vm0, %v492_v0  ;;  %v73_v3 = vsel %vm71_vm1, %v59_v1, 0  ;;  %v437_v6 = vld [vmem:[%s604_s3] sm:$0xff]   ;;  %v439_v8 = vld [vmem:[%s606_s5 + $0x10] sm:$0xff]   ;;  %v440_v17 = vld [vmem:[%s606_s5 + $0x8] sm:$0xff]   ;;  %vm225_vm4 = vcmask 523264   ;;  %vm353_vm5 = vcmask 31744  }
  0x1d   :  { %395 = vmatpush3.bf16.msra.mxu0 %v73_v3  ;;  %401 = vmatpush3.bf16.msra.mxu1 %v436_v5  ;;  %v361_v9 = vld [vmem:[%s603_s2] ss:$0 sm:$0xff]  ;;  %v442_v19 = vld [vmem:[%s608_s7 + $0x18] sm:$0xff]   ;;  %v443_v20 = vld [vmem:[%s608_s7 + $0x10] sm:$0xff]  }
  0x1e   :  { %408 = vmatprep.subr.bf16.mxu0 %v492_v0  ;;  %402 = vmatprep.subr.bf16.mxu1 %v492_v0  ;;  %v441_v18 = vld [vmem:[%s606_s5] sm:$0xff]   ;;  %v444_v29 = vld [vmem:[%s608_s7 + $0x8] sm:$0xff]  }
  0x1f   :  { %v363_v21 = vld [vmem:[#allocation2] ss:$0 sm:$0xff]  ;;  %v367_v31 = vld [vmem:[#allocation4] ss:$0 sm:$0xff] }
  0x20   :  { %397 = vmatmul.mubr.msk.bf16.vlgmr.msra.gmra.mxu0 %vm67_vm2, %v58_v4  ;;  %v445_v30 = vld [vmem:[%s608_s7] sm:$0xff]  }
  0x21   :  { %416 = vmatprep.mubr.msk.bf16.mxu0 %vm493_vm0, %v492_v0  ;;  %403 = vmatpush3.bf16.msra.mxu1 %v437_v6  ;;  %v373_v39 = vld [vmem:[%s609_s8] ss:$0 sm:$0xff] }
  0x22   :  { %420 = vmatprep.subr.bf16.mxu1 %v492_v0  ;;  %409 = vmatpush3.bf16.msra.mxu0 %v438_v7 }
  0x23   :  { %410 = vmatprep.subr.bf16.mxu0 %v492_v0 }
  0x26   :  { %411 = vmatpush3.bf16.msra.mxu0 %v439_v8 }
  0x27   :  { %412 = vmatprep.subr.bf16.mxu0 %v492_v0 }
  0x2a   :  { %413 = vmatpush3.bf16.msra.mxu0 %v440_v17 }
  0x2b   :  { %414 = vmatprep.subr.bf16.mxu0 %v492_v0 }
  0x2e   :  { %415 = vmatpush3.bf16.msra.mxu0 %v441_v18 }
  0xe0   :  { %v109_v10 = vpop.f32.mrf.mxu0 }
  0xe1   :  { %v110_v11 = vadd.f32 %v361_v9, %v109_v10 }
  0xe2   :  { %v398_v12 = vpop.f32.mrf.mxu0 }
  0xe3   :  { %v115_v13 = vmax.f32 %v110_v11, 0.0 }
  0xe4   :  { %v112_v14 = vpop.f32.mrf.mxu0 }
  0xe5   :  { %v116_v15 = vpack.c.bf16 %v115_v13, %v115_v13 }
  0xe6   :  { %v399_v16 = vpop.f32.mrf.mxu0 }
  0xe7   :  { %405 = vmatmul.mubr.msk.bf16.vlgmr.msra.gmra.mxu1 %vm140_vm3, %v116_v15 }
  0xe8   :  { %428 = vmatprep.mubr.msk.bf16.mxu1 %vm493_vm0, %v492_v0  ;;  %421 = vmatpush3.bf16.msra.mxu1 %v442_v19 }
  0xe9   :  { %422 = vmatprep.subr.bf16.mxu1 %v492_v0 }
  0xec   :  { %423 = vmatpush3.bf16.msra.mxu1 %v443_v20 }
  0xed   :  { %424 = vmatprep.subr.bf16.mxu1 %v492_v0 }
  0xf0   :  { %425 = vmatpush3.bf16.msra.mxu1 %v444_v29 }
  0xf1   :  { %426 = vmatprep.subr.bf16.mxu1 %v492_v0 }
  0xf4   :  { %427 = vmatpush3.bf16.msra.mxu1 %v445_v30 }
 0x1a7   :  { %v178_v22 = vpop.f32.mrf.mxu1 }
 0x1a8   :  { %v179_v23 = vadd.f32 %v363_v21, %v178_v22 }
 0x1a9   :  { %v406_v24 = vpop.f32.mrf.mxu1 }
 0x1aa   :  { %v184_v25 = vmax.f32 %v179_v23, 0.0 }
 0x1ab   :  { %v181_v26 = vpop.f32.mrf.mxu1 }
 0x1ac   :  { %v185_v27 = vpack.c.bf16 %v184_v25, %v184_v25 }
 0x1ad   :  { %v407_v28 = vpop.f32.mrf.mxu1 }
 0x1ae   :  { %417 = vmatmul.mubr.msk.bf16.vlgmr.msra.gmra.mxu0 %vm225_vm4, %v185_v27 }
 0x26e   :  { %v263_v32 = vpop.f32.mrf.mxu0 }
 0x26f   :  { %v264_v33 = vadd.f32 %v367_v31, %v263_v32 }
 0x270   :  { %v418_v34 = vpop.f32.mrf.mxu0 }
 0x271   :  { %v269_v35 = vmax.f32 %v264_v33, 0.0 }
 0x272   :  { %v266_v36 = vpop.f32.mrf.mxu0 }
 0x273   :  { %v270_v37 = vpack.c.bf16 %v269_v35, %v269_v35 }
 0x274   :  { %v419_v38 = vpop.f32.mrf.mxu0 }
 0x275   :  { %429 = vmatmul.mubr.msk.bf16.vlgmr.msra.gmra.mxu1 %vm225_vm4, %v270_v37 }
 0x335   :  { %v347_v40 = vpop.f32.mrf.mxu1 }
 0x336   :  { %v348_v41 = vadd.f32 %v373_v39, %v347_v40 }
 0x337   :  { %v430_v42 = vpop.f32.mrf.mxu1 }
 0x338   :  { %354 = vst.msk [vmem:[%s610_s9] sm:$0xff] %vm353_vm5, %v348_v41 }
 0x339   :  { %v350_v43 = vpop.f32.mrf.mxu1 }
 0x33b   :  { %v431_v44 = vpop.f32.mrf.mxu1 }
 0x33c   :  { %359 = vsyncpa [#allocation3], 1 }
 0x33d   :  { %360 = vsyncpa [#allocation5], 1 }

</bundles_post_ra>
